<compile_context>
chip_gen: v7x
topology: tpu7x:2x2x1
jax: 0.10.0
libtpu: 0.0.40
codegen_flags: <defaults>
</compile_context>

<pallas_src>
import math

import jax
import jax.numpy as jnp
from jax.experimental import pallas as pl
from jax.experimental.pallas import tpu as pltpu


def _round_up(n, m):
    return (n + m - 1) // m * m


def _tpu_generation():
    """Best-effort TPU generation (4/5/6/7); defaults to 6 if unknown."""
    try:
        kind = jax.devices()[0].device_kind.lower()
    except Exception:
        return 6
    for g in (7, 6, 5, 4):
        if f"v{g}" in kind or f"tpu{g}" in kind:
            return g
    return 6


def _vmem_ceiling_bytes(gen):
    """~75% of physical VMEM (headroom for compiler scratch / semaphores)."""
    try:
        cap = pltpu.get_tpu_info().vmem_capacity_bytes
    except Exception:
        cap = (64 if gen >= 7 else 128) * 1024 * 1024
    return max(32 * 1024 * 1024, int(cap) * 3 // 4)


def _tile_vmem_bytes(tile_m, tile_n, in_dim, mdim):
    """Rough VMEM footprint of one grid step (double-buffered inputs/outputs)."""
    def blk(rows, cols, itemsize, sub):
        return _round_up(max(rows, 1), sub) * _round_up(cols, 128) * itemsize
    return (2 * blk(tile_m, mdim, 4, 8)          # modulations (f32)
            + 2 * blk(tile_m, in_dim, 2, 16)     # x (bf16)
            + 4 * blk(1, in_dim, 4, 8)           # col_sq + mod_bias (f32)
            + 2 * blk(mdim, in_dim, 4, 8)        # mod_weight^T (f32)
            + 2 * blk(in_dim, tile_n, 2, 16)     # weight^T (bf16)
            + 2 * blk(1, tile_n, 4, 8)           # bias (f32)
            + 2 * blk(tile_m, tile_n, 4, 8)      # output (f32)
            + blk(tile_m, in_dim, 2, 16))        # x_eff scratch (bf16)


def demod_linear_kernel(mod_ref, x_ref, colsq_ref, mb_ref, mw_ref, wt_ref, b_ref,
                        out_ref, xeff_ref):
    # grid = (batch tiles, out_dim tiles); out_dim is the innermost (sequential) axis,
    # so the per-batch-tile modulation work runs once (j == 0), is cached in the x_eff
    # VMEM scratch, and is reused across all out_dim tiles (inner loop is pure MXU work).
    @pl.when(pl.program_id(1) == 0)
    def _():
        # scales = modulations @ mod_weight^T + mod_bias            (TM, in_dim), f32
        # Kept f32: demod ~ sign(scales) near scales == 0 (eps = 1e-8), so low-precision
        # scales could flip it and change outputs by O(1).
        scales = jnp.dot(mod_ref[...], mw_ref[...],
                         preferred_element_type=jnp.float32) + mb_ref[...]
        # demod[b,i] = rsqrt(sum_o (weight[o,i]*scales[b,i])^2 + eps)
        #            = rsqrt(scales^2 * col_sq + eps)               (EUP rsqrt, f32)
        demod = jax.lax.rsqrt(scales * scales * colsq_ref[...] + 1e-8)
        # fold modulation + demodulation into the input; bf16 only for the MXU feed
        xeff_ref[...] = (x_ref[...].astype(jnp.float32) * scales * demod
                         ).astype(xeff_ref.dtype)

    # (TM, in_dim) bf16 x (in_dim, TN) bf16 -> f32 accumulation on the MXU
    out_ref[...] = jnp.dot(xeff_ref[...], wt_ref[...],
                           preferred_element_type=jnp.float32) + b_ref[...]


def demodulated_linear(modulations, x, weight, mod_weight, mod_bias, bias,
                       *, tile_m=None, tile_n=None):
    """Pallas forward of DemodulatedLinear.

    modulations : (B, modulation_dim) f32
    x           : (B, in_dim)         f32
    weight      : (out_dim, in_dim)   f32  (torch nn.Parameter layout)
    mod_weight  : (in_dim, modulation_dim) f32  (torch nn.Linear weight layout)
    mod_bias    : (in_dim,)           f32
    bias        : (out_dim,)          f32
    returns     : (B, out_dim)        f32
    """
    B, in_dim = x.shape
    out_dim = weight.shape[0]
    mdim = modulations.shape[-1]
    f32, bf16 = jnp.float32, jnp.bfloat16

    gen = _tpu_generation()
    vmem_ceiling = _vmem_ceiling_bytes(gen)

    # ---- wrapper-side prep: per-weight constants, transposes, dtype casts ----
    w_f32 = weight.astype(f32)
    col_sq = jnp.sum(w_f32 * w_f32, axis=0, keepdims=True)        # (1, in_dim) f32
    w_t = w_f32.T.astype(bf16)                                    # (in_dim, out_dim) bf16
    mw_t = mod_weight.astype(f32).T                               # (mdim, in_dim) f32
    mb = mod_bias.astype(f32).reshape(1, in_dim)
    b2 = bias.astype(f32).reshape(1, out_dim)
    modulations = modulations.astype(f32)
    x = x.astype(bf16)          # x only feeds the bf16 x_eff; scales/demod stay f32

    # ---- tile_n: 256 on v6e/v7x (256-wide MXU), 128 on v5e; lane-dense stores ----
    if tile_n is None:
        tile_n = 128 if gen <= 5 else 256
    tile_n = _round_up(max(tile_n, 128), 128)
    tile_n = min(tile_n, _round_up(out_dim, 128))

    n_pad = _round_up(out_dim, tile_n)
    if n_pad != out_dim:
        w_t = jnp.pad(w_t, ((0, 0), (0, n_pad - out_dim)))
        b2 = jnp.pad(b2, ((0, 0), (0, n_pad - out_dim)))

    # ---- tile_m: as large as the VMEM budget allows (arith. intensity ~ tile_m) ----
    cap_m = {4: 256, 5: 256, 6: 1024, 7: 512}.get(gen, 256)
    if tile_m is None:
        tile_m = min(_round_up(B, 16), cap_m)
        while tile_m > 16 and _tile_vmem_bytes(tile_m, tile_n, in_dim, mdim) > vmem_ceiling:
            tile_m = _round_up(tile_m // 2, 16)
    tile_m = _round_up(max(tile_m, 16), 16)       # bf16 packs 2 rows / sublane

    m_pad = _round_up(B, tile_m)
    if m_pad != B:
        modulations = jnp.pad(modulations, ((0, m_pad - B), (0, 0)))
        x = jnp.pad(x, ((0, m_pad - B), (0, 0)))

    grid = (m_pad // tile_m, n_pad // tile_n)

    vmem_limit = int(min(vmem_ceiling,
                         max(32 * 1024 * 1024,
                             _tile_vmem_bytes(tile_m, tile_n, in_dim, mdim) * 5 // 4)))

    out = pl.pallas_call(
        demod_linear_kernel,
        out_shape=jax.ShapeDtypeStruct((m_pad, n_pad), f32),
        grid_spec=pltpu.PrefetchScalarGridSpec(
            num_scalar_prefetch=0,
            grid=grid,
            in_specs=[
                pl.BlockSpec((tile_m, mdim), lambda i, j: (i, 0)),    # modulations (f32)
                pl.BlockSpec((tile_m, in_dim), lambda i, j: (i, 0)),  # x (bf16)
                pl.BlockSpec((1, in_dim), lambda i, j: (0, 0)),       # col_sq (f32)
                pl.BlockSpec((1, in_dim), lambda i, j: (0, 0)),       # mod_bias (f32)
                pl.BlockSpec((mdim, in_dim), lambda i, j: (0, 0)),    # mod_weight^T (f32)
                pl.BlockSpec((in_dim, tile_n), lambda i, j: (0, j)),  # weight^T (bf16)
                pl.BlockSpec((1, tile_n), lambda i, j: (0, j)),       # bias (f32)
            ],
            out_specs=pl.BlockSpec((tile_m, tile_n), lambda i, j: (i, j)),
            scratch_shapes=[pltpu.VMEM((tile_m, in_dim), jnp.bfloat16)],  # x_eff cache
        ),
        compiler_params=pltpu.CompilerParams(
            # N axis MUST stay "arbitrary": the x_eff cache is filled at j == 0 and
            # reused for all j on the same core (see correctness note in the review).
            dimension_semantics=("parallel", "arbitrary"),
            vmem_limit_bytes=vmem_limit,
        ),
    )(modulations, x, col_sq, mb, mw_t, w_t, b2)

    return out[:B, :out_dim]


if __name__ == "__main__":
    # Small shapes that still exercise the grid (2 batch tiles x 2 out_dim tiles),
    # out_dim padding (192 -> 256) and batch padding (24 -> 32).
    B, modulation_dim, in_dim, out_dim = 24, 16, 64, 192

    key = jax.random.PRNGKey(0)
    k1, k2, k3, k4, k5, k6 = jax.random.split(key, 6)

    # deterministic init mirroring the torch module's __init__ / _init_param:
    #   weight, bias ~ U[-sqrt(1/in_dim), sqrt(1/in_dim)]
    #   modulation nn.Linear default ~ U[-sqrt(1/modulation_dim), sqrt(1/modulation_dim)]
    k_w = math.sqrt(1.0 / in_dim)
    weight = jax.random.uniform(k1, (out_dim, in_dim), jnp.float32, -k_w, k_w)
    bias = jax.random.uniform(k2, (out_dim,), jnp.float32, -k_w, k_w)

    k_m = math.sqrt(1.0 / modulation_dim)
    mod_weight = jax.random.uniform(k3, (in_dim, modulation_dim), jnp.float32, -k_m, k_m)
    mod_bias = jax.random.uniform(k4, (in_dim,), jnp.float32, -k_m, k_m)

    modulations = jax.random.normal(k5, (B, modulation_dim), jnp.float32)
    x = jax.random.normal(k6, (B, in_dim), jnp.float32)

    out = demodulated_linear(modulations, x, weight, mod_weight, mod_bias, bias,
                             tile_m=16, tile_n=128)
    out = jax.block_until_ready(out)

    # pure-JAX reference following the torch forward literally, full f32 precision
    hp = jax.lax.Precision.HIGHEST
    scales_ref = (jnp.matmul(modulations, mod_weight.T, precision=hp)
                  + mod_bias)[:, None, :]                                 # (B,1,in)
    w1 = weight[None, :, :] * scales_ref                                  # (B,out,in)
    w2 = w1 * jax.lax.rsqrt(jnp.sum(w1 * w1, axis=-2, keepdims=True) + 1e-8)
    ref = jnp.einsum("bi,boi->bo", x, w2, precision=hp) + bias

    assert out.shape == (B, out_dim), out.shape
    max_err = float(jnp.max(jnp.abs(out - ref)))
    # x / x_eff / weight^T are bf16 (f32 accumulation, f32 scales/demod path), so compare
    # against the full-f32 reference with a bf16-appropriate tolerance (typical ~1e-3).
    assert jnp.allclose(out, ref, atol=2.5e-2, rtol=2.5e-2), max_err
    print("KERNEL_OK")
</pallas_src>

<mosaic_0001>
module attributes {stable_mosaic.version = 11 : i64} {
  func.func @demod_linear_kernel(%arg0: i32, %arg1: i32, %arg2: memref<16x16xf32, #tpu.memory_space<vmem>>, %arg3: memref<16x64xbf16, #tpu.memory_space<vmem>>, %arg4: memref<1x64xf32, #tpu.memory_space<vmem>>, %arg5: memref<1x64xf32, #tpu.memory_space<vmem>>, %arg6: memref<16x64xf32, #tpu.memory_space<vmem>>, %arg7: memref<64x128xbf16, #tpu.memory_space<vmem>>, %arg8: memref<1x128xf32, #tpu.memory_space<vmem>>, %arg9: memref<16x128xf32, #tpu.memory_space<vmem>>, %arg10: memref<16x64xbf16, #tpu.memory_space<vmem>>) attributes {dimension_semantics = [#tpu.dimension_semantics<parallel>, #tpu.dimension_semantics<arbitrary>], iteration_bounds = array<i64: 2, 2>, scalar_prefetch = 0 : i64, scratch_operands = 1 : i64, tpu.core_type = #tpu.core_type<tc>, window_params = [{transform_indices = @transform_0, window_bounds = array<i64: 16, 16>}, {transform_indices = @transform_1, window_bounds = array<i64: 16, 64>}, {pipeline_mode = #tpu.pipeline_mode<synchronous>, transform_indices = @transform_2, window_bounds = array<i64: 1, 64>}, {pipeline_mode = #tpu.pipeline_mode<synchronous>, transform_indices = @transform_3, window_bounds = array<i64: 1, 64>}, {pipeline_mode = #tpu.pipeline_mode<synchronous>, transform_indices = @transform_4, window_bounds = array<i64: 16, 64>}, {transform_indices = @transform_5, window_bounds = array<i64: 64, 128>}, {transform_indices = @transform_6, window_bounds = array<i64: 1, 128>}, {transform_indices = @transform_7, window_bounds = array<i64: 16, 128>}]} {
    %c0_i32 = arith.constant 0 : i32
    %0 = arith.cmpi eq, %arg1, %c0_i32 : i32
    %1 = arith.extui %0 : i1 to i32
    %c0_i32_0 = arith.constant 0 : i32
    %2 = arith.cmpi ne, %1, %c0_i32_0 : i32
    scf.if %2 {
      %c0_8 = arith.constant 0 : index
      %c0_9 = arith.constant 0 : index
      %10 = vector.load %arg2[%c0_8, %c0_9] : memref<16x16xf32, #tpu.memory_space<vmem>>, vector<16x16xf32>
      %c0_10 = arith.constant 0 : index
      %c0_11 = arith.constant 0 : index
      %11 = vector.load %arg6[%c0_10, %c0_11] : memref<16x64xf32, #tpu.memory_space<vmem>>, vector<16x64xf32>
      %cst_12 = arith.constant dense<0.000000e+00> : vector<16x64xf32>
      %12 = tpu.matmul %10, %11, %cst_12 {dimension_numbers = #tpu.dot_dimension_numbers<[1], [0], [0], [1], [0, 0, 1, 1], [], []>} : vector<16x16xf32>, vector<16x64xf32>, vector<16x64xf32> -> vector<16x64xf32>
      %c0_13 = arith.constant 0 : index
      %c0_14 = arith.constant 0 : index
      %13 = vector.load %arg5[%c0_13, %c0_14] : memref<1x64xf32, #tpu.memory_space<vmem>>, vector<1x64xf32>
      %14 = vector.broadcast %13 : vector<1x64xf32> to vector<16x64xf32>
      %15 = arith.addf %12, %14 : vector<16x64xf32>
      %16 = arith.mulf %15, %15 : vector<16x64xf32>
      %c0_15 = arith.constant 0 : index
      %c0_16 = arith.constant 0 : index
      %17 = vector.load %arg4[%c0_15, %c0_16] : memref<1x64xf32, #tpu.memory_space<vmem>>, vector<1x64xf32>
      %18 = vector.broadcast %17 : vector<1x64xf32> to vector<16x64xf32>
      %19 = arith.mulf %16, %18 : vector<16x64xf32>
      %cst_17 = arith.constant 9.99999993E-9 : f32
      %20 = vector.broadcast %cst_17 : f32 to vector<16x64xf32>
      %21 = arith.addf %19, %20 : vector<16x64xf32>
      %22 = math.rsqrt %21 : vector<16x64xf32>
      %c0_18 = arith.constant 0 : index
      %c0_19 = arith.constant 0 : index
      %23 = vector.load %arg3[%c0_18, %c0_19] : memref<16x64xbf16, #tpu.memory_space<vmem>>, vector<16x64xbf16>
      %24 = arith.extf %23 : vector<16x64xbf16> to vector<16x64xf32>
      %25 = arith.mulf %24, %15 : vector<16x64xf32>
      %26 = arith.mulf %25, %22 : vector<16x64xf32>
      %27 = arith.truncf %26 : vector<16x64xf32> to vector<16x64xbf16>
      %c0_20 = arith.constant 0 : index
      %c0_21 = arith.constant 0 : index
      %28 = vector.load %arg10[%c0_20, %c0_21] : memref<16x64xbf16, #tpu.memory_space<vmem>>, vector<16x64xbf16>
      tpu.vector_store %arg10[%c0_20, %c0_21], %27 {strides = array<i32>} : memref<16x64xbf16, #tpu.memory_space<vmem>>, vector<16x64xbf16>,
    } else {
    }
    %c0 = arith.constant 0 : index
    %c0_1 = arith.constant 0 : index
    %3 = vector.load %arg10[%c0, %c0_1] : memref<16x64xbf16, #tpu.memory_space<vmem>>, vector<16x64xbf16>
    %c0_2 = arith.constant 0 : index
    %c0_3 = arith.constant 0 : index
    %4 = vector.load %arg7[%c0_2, %c0_3] : memref<64x128xbf16, #tpu.memory_space<vmem>>, vector<64x128xbf16>
    %cst = arith.constant dense<0.000000e+00> : vector<16x128xf32>
    %5 = tpu.matmul %3, %4, %cst {dimension_numbers = #tpu.dot_dimension_numbers<[1], [0], [0], [1], [0, 0, 1, 1], [], []>} : vector<16x64xbf16>, vector<64x128xbf16>, vector<16x128xf32> -> vector<16x128xf32>
    %c0_4 = arith.constant 0 : index
    %c0_5 = arith.constant 0 : index
    %6 = vector.load %arg8[%c0_4, %c0_5] : memref<1x128xf32, #tpu.memory_space<vmem>>, vector<1x128xf32>
    %7 = vector.broadcast %6 : vector<1x128xf32> to vector<16x128xf32>
    %8 = arith.addf %5, %7 : vector<16x128xf32>
    %c0_6 = arith.constant 0 : index
    %c0_7 = arith.constant 0 : index
    %9 = vector.load %arg9[%c0_6, %c0_7] : memref<16x128xf32, #tpu.memory_space<vmem>>, vector<16x128xf32>
    tpu.vector_store %arg9[%c0_6, %c0_7], %8 {strides = array<i32>} : memref<16x128xf32, #tpu.memory_space<vmem>>, vector<16x128xf32>,
    return
  }
  func.func @transform_0(%arg0: i32, %arg1: i32) -> (i32, i32) {
    %c0_i32 = arith.constant 0 : i32
    %c0_i32_0 = arith.constant 0 : i32
    return %arg0, %c0_i32 : i32, i32
  }
  func.func @transform_1(%arg0: i32, %arg1: i32) -> (i32, i32) {
    %c0_i32 = arith.constant 0 : i32
    %c0_i32_0 = arith.constant 0 : i32
    return %arg0, %c0_i32 : i32, i32
  }
  func.func @transform_2(%arg0: i32, %arg1: i32) -> (i32, i32) {
    %c0_i32 = arith.constant 0 : i32
    %c0_i32_0 = arith.constant 0 : i32
    %c0_i32_1 = arith.constant 0 : i32
    return %c0_i32, %c0_i32_0 : i32, i32
  }
  func.func @transform_3(%arg0: i32, %arg1: i32) -> (i32, i32) {
    %c0_i32 = arith.constant 0 : i32
    %c0_i32_0 = arith.constant 0 : i32
    %c0_i32_1 = arith.constant 0 : i32
    return %c0_i32, %c0_i32_0 : i32, i32
  }
  func.func @transform_4(%arg0: i32, %arg1: i32) -> (i32, i32) {
    %c0_i32 = arith.constant 0 : i32
    %c0_i32_0 = arith.constant 0 : i32
    %c0_i32_1 = arith.constant 0 : i32
    return %c0_i32, %c0_i32_0 : i32, i32
  }
  func.func @transform_5(%arg0: i32, %arg1: i32) -> (i32, i32) {
    %c0_i32 = arith.constant 0 : i32
    %c0_i32_0 = arith.constant 0 : i32
    return %c0_i32, %arg1 : i32, i32
  }
  func.func @transform_6(%arg0: i32, %arg1: i32) -> (i32, i32) {
    %c0_i32 = arith.constant 0 : i32
    %c0_i32_0 = arith.constant 0 : i32
    return %c0_i32, %arg1 : i32, i32
  }
  func.func @transform_7(%arg0: i32, %arg1: i32) -> (i32, i32) {
    %c0_i32 = arith.constant 0 : i32
    return %arg0, %arg1 : i32, i32
  }
}

</mosaic_0001>

<bundles_post_ra>
// kernel: tpu_custom_call.1
= control target key start
LH: loop header
LB: loop body
LE: loop exit
PB: predicated region body
PF: predicated region fallthrough
CT: control target
= control target key end

     0   :  { %s1811_s0 = inlined_call_operand.vmem [shape: f32[32,16], index: 0, kind: input, shape index: {}]   ;;  %s1812_s1 = inlined_call_operand.hbm [shape: bf16[32,64], index: 1, kind: input, shape index: {}]   ;;  %s1813_s2 = inlined_call_operand.hbm [shape: f32[1,64], index: 2, kind: input, shape index: {}]   ;;  %s1814_s3 = inlined_call_operand.hbm [shape: f32[1,64], index: 3, kind: input, shape index: {}]   ;;  %s1815_s4 = inlined_call_operand.hbm [shape: f32[16,64], index: 4, kind: input, shape index: {}]   ;;  %s1816_s5 = inlined_call_operand.vmem [shape: bf16[64,256], index: 5, kind: input, shape index: {}]   ;;  %s1817_s6 = inlined_call_operand.vmem [shape: f32[1,256], index: 6, kind: input, shape index: {}]   ;;  %s1818_s7 = inlined_call_operand.hbm [shape: f32[32,256], index: 7, kind: output, shape index: {}]  }
   0x1   :  { %1837 = sst [smem:[#allocation29_spill]] %s1811_s0 }
   0x2   :  { %1838 = sst [smem:[#allocation30_spill]] %s1817_s6 }
   0x3   :  { %1839 = sst [smem:[#allocation31_spill]] %s1818_s7 }
   0x4   :  { %12 = vsyncpa [#allocation4], 0 }
   0x5   :  { %14 = vsyncpa [#allocation4 + $0x1], 0 }
   0x6   :  { %15 = vsyncpa [#allocation7], 0 }
   0x7   :  { %16 = vsyncpa [#allocation10], 0 }
   0x8   :  { %17 = vsyncpa [#allocation5], 0 }
   0x9   :  { %19 = vsyncpa [#allocation5 + $0x1], 0  ;;  %s1410_s24 = smov 0   ;;  %s1412_s25 = smov 0  }
   0xa   :  { %s1414_s26 = smov 0   ;;  %s1416_s27 = smov 0  }
   0xb   :  { %s1418_s28 = smov 0   ;;  %s1420_s29 = smov 0  }
   0xc   :  { %s1422_s30 = smov 0   ;;  %s1424_s8 = smov 0  }
   0xd   :  { %s1426_s9 = smov 0   ;;  %s1428_s10 = smov 0  }
   0xe   :  { %s1430_s11 = smov 0   ;;  %s1432_s12 = smov 0  }
   0xf   :  { %s1434_s13 = smov 0  }
  0x10 LB: > { %1840 = sst [smem:[#allocation17_spill]] %s1306_s24  ;;  %s1819_s14 = sadd.s32 4294967295, %s1354_s13   ;;  %s1354_s13 = sphi %s1434_s13, %s25_s13   ;;  %s1350_s12 = sphi %s1432_s12, %s1901_s12   ;;  %s1346_s11 = sphi %s1430_s11, %s1900_s11   ;;  %s1342_s10 = sphi %s1428_s10, %s1899_s10   ;;  %s1338_s9 = sphi %s1426_s9, %s1898_s9   ;;  %s1334_s8 = sphi %s1424_s8, %s1897_s8   ;;  %s1330_s30 = sphi %s1422_s30, %s1896_s30   ;;  %s1326_s29 = sphi %s1420_s29, %s1895_s29   ;;  %s1322_s28 = sphi %s1418_s28, %s1894_s28   ;;  %s1318_s27 = sphi %s1416_s27, %s1893_s27   ;;  %s1314_s26 = sphi %s1414_s26, %s1888_s26   ;;  %s1310_s25 = sphi %s1412_s25, %s1887_s25   ;;  %s1306_s24 = sphi %s1410_s24, %s1886_s24  }
  0x11   : > { %1841 = sst [smem:[#allocation18_spill]] %s1310_s25  ;;  %s34_s16 = sadd.s32 1, %s1346_s11 }
  0x12   : > { %1842 = sst [smem:[#allocation19_spill]] %s1314_s26  ;;  %s37_s17 = sadd.s32 1, %s1350_s12 }
  0x13   : > { %1843 = sst [smem:[#allocation20_spill]] %s1338_s9  ;;  %p35_p0 = scmp.ge.s32.totalorder %s34_s16, 2 }
  0x14   : > { %1844 = sst [smem:[#allocation21_spill]] %s1342_s10  ;;  %s70_s18 = sadd.s32 1, %s1334_s8 }
  0x15   : > { %p77_p1 = scmp.ne.s32.totalorder %s1334_s8, %s1330_s30  ;;  %p78_p2 = scmp.eq.s32.totalorder %s1354_s13, 0 }
  0x16   : > { %s1903_s16 = smov (%p35_p0, %s34_s16), 0  ;;  %s1905_s17 = smov (!%p35_p0, %s37_s17), %s1350_s12 }
  0x17   : > { %1845 = sst [smem:[#allocation22_spill]] %s1903_s16  ;;  %p1486_p3 = por %p78_p2, %p77_p1 }
  0x18   : > { %p83_p4 = scmp.ne.s32.totalorder %s1330_s30, %s1326_s29  ;;  %p39_p5 = scmp.ge.s32.totalorder %s1905_s17, 2 }
  0x19   : > { %s1846_s19 = scalar_select %p1486_p3, 1, 0 }
  0x1a   : > { %p1493_p6 = scmp.eq.s32.totalorder %s1819_s14, 0  ;;  %s156_s21 = ssub.s32 %s1346_s11, %s1903_s16 }
  0x1b   : > { %s159_s22 = sadd.s32 1, %s1322_s28  ;;  %s1907_s17 = smov (%p39_p5, %s1905_s17), 0 }
  0x1c   : > { %s1847_s20 = scalar_select %p1493_p6, 1, 0 }
  0x1d   : > { %1848 = sst [smem:[#allocation23_spill]] %s1907_s17  ;;  %p1504_p7 = por %p1493_p6, %p83_p4 }
  0x1e   : > { %p157_p8 = scmp.eq.s32.totalorder %s156_s21, 0  ;;  %s67_s29 = ssub.s32 %s1350_s12, %s1907_s17 }
  0x1f   : > { %s1849_s23 = scalar_select %p1504_p7, 1, 0 }
  0x20   : > { %p166_p9 = scmp.ne.s32.totalorder %s1322_s28, %s1318_s27  ;;  %p68_p10 = scmp.eq.s32.totalorder %s67_s29, 0 }
  0x21   : > { %s210_s15 = sor.u32 %s156_s21, %s67_s29  ;;  %s213_s0 = sadd.s32 1, %s1314_s26 }
  0x22   : > { %s1513_s14 = scalar_select %p157_p8, %s1322_s28, %s159_s22  }
  0x23   : > { %s1516_s16 = scalar_select %p68_p10, %s1334_s8, %s70_s18  }
  0x24   : > { %1850 = sst [smem:[#allocation24_spill]] %s1513_s14  ;;  %p1520_p11 = por %p166_p9, %p78_p2 }
  0x25   : > { %1851 = sst [smem:[#allocation25_spill]] %s1516_s16  ;;  %p211_p12 = scmp.eq.s32.totalorder %s210_s15, 0 }
  0x26   : > { %s1852_s7 = scalar_select %p1520_p11, 1, 0 }
  0x27   : > { %p223_p13 = scmp.ne.s32.totalorder %s1314_s26, %s1310_s25  ;;  %s1854_s17 = sadd.s32 4294967295, %s1354_s13  }
  0x28   : > { %s1528_s6 = scalar_select %p211_p12, %s1314_s26, %s213_s0  }
  0x29   : > { %p224_p0 = scmp.eq.s32.totalorder %s1854_s17, 3  ;;  %p229_p1 = scmp.ne.s32.totalorder %s1310_s25, %s1306_s24 }
  0x2a   : > { %1853 = sst [smem:[#allocation26_spill]] %s1528_s6  ;;  %s1855_s9 = sadd.s32 4294967294, %s1354_s13  }
  0x2b   : > { %p230_p4 = scmp.eq.s32.totalorder %s1855_s9, 3  ;;  %p861_p5 = scmp.ge.s32.totalorder %s1354_s13, 1 }
  0x2c   : > { %p1537_p8 = por %p224_p0, %p223_p13  ;;  %p237_p2 = scmp.lt.s32.totalorder %s1354_s13, 5 }
  0x2d   : > { %p1542_p9 = por %p230_p4, %p229_p1  ;;  %s1356_s0 = smov [#allocation6]  }
  0x2e   : > { %s1856_s18 = scalar_select %p1537_p8, 1, 0 }
  0x2f   : > { %s1858_s21 = scalar_select %p1542_p9, 1, 0 }
  0x30   : > { %1857 = sst [smem:[#allocation27_spill]] %s1856_s18  ;;  %p1546_p10 = pnand %p861_p5, %p237_p2 }
  0x31   : > { %1859 = sst [smem:[#allocation28_spill]] %s1858_s21  ;;  %s250_s17 = sshll.u32 %s1356_s0, 4  ;;  %s251_s17 = int_to_ptr.vmem [resolvable:$true] %s250_s17 }
  0x32   : > { %s1860_s15 = scalar_select %p1546_p10, 1, 0 }
  0x33   : > { %p951_p12 = pneg %p1546_p10  ;;  %s1357_s9 = smov [#allocation8]  }
  0x34   : > { %s261_s22 = sshll.u32 %s1357_s9, 4  ;;  %s1358_s16 = smov [#allocation9]   ;;  %s1558_s22 = int_to_ptr.vmem [resolvable:$true] %s261_s22 }
  0x35   : > { %p1554_p13 = pnand %p951_p12, %p1493_p6  ;;  %s271_s14 = sshll.u32 %s1358_s16, 4  ;;  %s1560_s14 = int_to_ptr.vmem [resolvable:$true] %s271_s14 }
  0x36   : > { %s1096_s0 = scalar_lea.hbm %s1813_s2, 16 }
  0x37   : > { %p1097_p0 = scmp.ne.s32.totalorder %s1813_s2, %s1096_s0  ;;  %p1570_p1 = pneg %p1554_p13 }
  0x38   : > { %p1103_p2 = scmp.lt.u32.totalorder %s1096_s0, %s1813_s2 }
  0x39   : > { %p1099_p4 = pnand %p1570_p1, %p1097_p0 }
  0x3b   : > { %p1100_p5 = pneg %p1099_p4 }
  0x3d   : > { %p1105_p12 = pnand %p1103_p2, %p1100_p5 }
  0x3f   : > { %1108 = shalt.err (!%p1105_p12)
}
  0x40   : > { %s1109_s6 = scalar_lea.vmem %s251_s17, 16  ;;  %s1116_s24 = scalar_lea.vmem %s251_s17, 32 }
  0x41   : > { %p1110_p9 = scmp.ne.s32.totalorder %s251_s17, %s1109_s6  ;;  %p1117_p7 = scmp.lt.s32.totalorder %s251_s17, %s251_s17 }
  0x42   : > { %p1118_p10 = scmp.lt.s32.totalorder %s1116_s24, %s1109_s6 }
  0x43   : > { %p1112_p8 = pnand %p1110_p9, %p1570_p1 }
  0x44   : > { %p1119_p11 = por %p1118_p10, %p1117_p7 }
  0x45   : > { %p1113_p6 = pneg %p1112_p8 }
  0x47   : > { %p1120_p3 = pnand %p1119_p11, %p1113_p6 }
  0x49   : > { %1123 = shalt.err (!%p1120_p3)
}
  0x4a   : > { %954 = dma.hbm_to_vmem [thread:$0]  (!%p1554_p13), %s1813_s2, 16, %s251_s17, [#allocation7]  }
  0x4b   : > { %s1124_s16 = scalar_lea.hbm %s1814_s3, 16 }
  0x4c   : > { %p1125_p8 = scmp.ne.s32.totalorder %s1814_s3, %s1124_s16  ;;  %p1131_p3 = scmp.lt.u32.totalorder %s1124_s16, %s1814_s3 }
  0x4e   : > { %p1127_p9 = pnand %p1125_p8, %p1570_p1 }
  0x50   : > { %p1128_p7 = pneg %p1127_p9 }
  0x52   : > { %p1133_p6 = pnand %p1131_p3, %p1128_p7 }
  0x54   : > { %1136 = shalt.err (!%p1133_p6)
}
  0x55   : > { %s1137_s17 = scalar_lea.vmem %s1558_s22, 16  ;;  %s1144_s25 = scalar_lea.vmem %s1558_s22, 32 }
  0x56   : > { %p1138_p11 = scmp.ne.s32.totalorder %s1558_s22, %s1137_s17  ;;  %p1145_p4 = scmp.lt.s32.totalorder %s1558_s22, %s1558_s22 }
  0x57   : > { %p1146_p5 = scmp.lt.s32.totalorder %s1144_s25, %s1137_s17 }
  0x58   : > { %p1140_p10 = pnand %p1138_p11, %p1570_p1 }
  0x59   : > { %p1147_p2 = por %p1146_p5, %p1145_p4 }
  0x5a   : > { %p1141_p0 = pneg %p1140_p10 }
  0x5c   : > { %p1148_p12 = pnand %p1147_p2, %p1141_p0 }
  0x5e   : > { %1151 = shalt.err (!%p1148_p12)
}
  0x5f   : > { %957 = dma.hbm_to_vmem [thread:$0]  (!%p1554_p13), %s1814_s3, 16, %s1558_s22, [#allocation7]  }
  0x60   : > { %s1152_s0 = scalar_lea.hbm %s1815_s4, 256 }
  0x61   : > { %p1153_p8 = scmp.ne.s32.totalorder %s1815_s4, %s1152_s0  ;;  %p1159_p3 = scmp.lt.u32.totalorder %s1152_s0, %s1815_s4 }
  0x63   : > { %p1155_p9 = pnand %p1153_p8, %p1570_p1 }
  0x65   : > { %p1156_p7 = pneg %p1155_p9 }
  0x67   : > { %p1161_p6 = pnand %p1159_p3, %p1156_p7 }
  0x69   : > { %1164 = shalt.err (!%p1161_p6)
}
  0x6a   : > { %s1165_s22 = scalar_lea.vmem %s1560_s14, 256  ;;  %p1173_p4 = scmp.lt.s32.totalorder %s1560_s14, %s1560_s14 }
  0x6b   : > { %p1166_p11 = scmp.ne.s32.totalorder %s1560_s14, %s1165_s22  ;;  %p1174_p5 = scmp.lt.s32.totalorder %s1165_s22, %s1165_s22 }
  0x6d   : > { %p1168_p10 = pnand %p1166_p11, %p1570_p1  ;;  %p1175_p2 = por %p1174_p5, %p1173_p4 }
  0x6f   : > { %p1169_p0 = pneg %p1168_p10 }
  0x71   : > { %p1176_p12 = pnand %p1175_p2, %p1169_p0 }
  0x73   : > { %1179 = shalt.err (!%p1176_p12)
}
  0x74   : > { %s1359_s25 = smov 128   ;;  %s1360_s10 = smov 8  }
  0x75   : > { %960 = dma.hbm_to_vmem [thread:$0]  (!%p1554_p13), %s1815_s4, 256, %s1560_s14, [#allocation10], %s1359_s25, %s1359_s25, %s1360_s10  }
  0x76   : > { %p865_p8 = scmp.ge.s32.totalorder %s1354_s13, 4 }
  0x77   : > { %s294_s9 = sand.u32 (!%p865_p8), 1, %s1334_s8   ;;  %s897_s18 = sshll.u32 (!%p865_p8), %s1350_s12, 7 }
  0x78   : > { %281 = sbr.rel (%p865_p8) target bundleno = 156 (0x9c), region = 28  ;;  %s866_s0 = sshll.u32 (!%p865_p8), %s294_s9, 3 }
  0x79   : > { %s1639_s24 = scalar_lea.hbm (!%p865_p8), %s1812_s1, %s897_s18  ;;  %s298_s29 = scalar_lea.vmem (!%p865_p8), [#allocation3], %s866_s0 }
  0x7a   : > { %s305_s14 = sshll.u32 (!%p865_p8), %s298_s29, 4  ;;  %s1643_s17 = scalar_lea.sflag (!%p865_p8), [#allocation4], %s294_s9  ;;  %s1641_s14 = int_to_ptr.vmem [resolvable:$true] %s305_s14 }
  0x7b   : > { %s1180_s22 = scalar_lea.hbm (!%p865_p8), %s1639_s24, 128  ;;  %p1863_p1 = scmp.ne.s32.totalorder (!%p865_p8), %s1846_s19, 0 }
  0x7c   : > { %p1181_p13 = scmp.ne.s32.totalorder (!%p865_p8), %s1639_s24, %s1180_s22  ;;  %s1184_s26 = scalar_lea.hbm (!%p865_p8), %s1812_s1, 256 }
  0x7d   : > { %p1185_p3 = scmp.lt.u32.totalorder (!%p865_p8), %s1639_s24, %s1812_s1  ;;  %p1186_p6 = scmp.lt.u32.totalorder (!%p865_p8), %s1184_s26, %s1180_s22 }
  0x7e   : > { %p1182_p9 = pnand (!%p865_p8), %p1181_p13, %p1863_p1  ;;  %p1188_p10 = scmp.lt.u32.totalorder (!%p865_p8), %s1180_s22, %s1639_s24 }
  0x7f   : > { %p1187_p11 = por %p1186_p6, %p1185_p3 }
  0x80   : > { %p1183_p7 = pneg %p1182_p9 }
  0x81   : > { %p1189_p0 = por %p1188_p10, %p1187_p11 }
  0x83   : > { %p1190_p4 = pnand %p1189_p0, %p1183_p7 }
  0x85   : > { %1193 = shalt.err (!%p1190_p4)
}
  0x86   : > { %s1194_s9 = scalar_lea.vmem %s1641_s14, 128  ;;  %s1361_s0 = smov [#allocation3]  }
  0x87   : > { %p1195_p5 = scmp.ne.s32.totalorder %s1641_s14, %s1194_s9  ;;  %s1198_s16 = sshll.u32 %s1361_s0, 4  ;;  %s1199_s16 = int_to_ptr.vmem [resolvable:$false] %s1198_s16 }
  0x88   : > { %s1200_s6 = scalar_lea.vmem %s1199_s16, 256  ;;  %p1201_p8 = scmp.lt.s32.totalorder %s1641_s14, %s1199_s16 }
  0x89   : > { %p1196_p2 = pnand %p1195_p5, %p1863_p1  ;;  %p1202_p13 = scmp.lt.s32.totalorder %s1200_s6, %s1194_s9 }
  0x8b   : > { %p1197_p12 = pneg %p1196_p2  ;;  %p1203_p9 = por %p1202_p13, %p1201_p8 }
  0x8d   : > { %p1204_p3 = pnand %p1203_p9, %p1197_p12 }
  0x8f   : > { %1207 = shalt.err (!%p1204_p3)
}
  0x90   : > { %s1362_s29 = smov 64   ;;  %s1363_s22 = smov 4  }
  0x91   : > { %941 = dma.hbm_to_vmem [thread:$0]  (%p1863_p1), %s1639_s24, 128, %s1641_s14, %s1643_s17, %s1362_s29, %s1362_s29, %s1363_s22  }
  0x92   : > { %p1864_p7 = scmp.ne.s32.totalorder %s1852_s7, 0 }
  0x93   : > { %s316_s25 = sand.u32 (%p1864_p7), 1, %s1322_s28   ;;  %s870_s10 = sshll.u32 (%p1864_p7), %s1346_s11, 2 }
  0x94   : > { %314 = sbr.rel (!%p1864_p7) target bundleno = 156 (0x9c), region = 40  ;;  %s869_s26 = sshll.u32 (%p1864_p7), %s316_s25, 5 }
  0x95   : > { %s320_s9 = scalar_lea.vmem (%p1864_p7), %s1816_s5, %s870_s10  ;;  %s318_s0 = scalar_lea.vmem (%p1864_p7), [#allocation11], %s869_s26 }
  0x96   : > { %v336_v0 = vld [vmem:[%s320_s9] sm:$0xf] (%p1864_p7)  ;;  %v338_v1 = vld [vmem:[%s320_s9 + $0x8] sm:$0xf] (%p1864_p7)  ;;  %v340_v2 = vld [vmem:[%s320_s9 + $0x10] sm:$0xf] (%p1864_p7) }
  0x97   : > { %337 = vst [vmem:[%s318_s0] sm:$0xf] (%p1864_p7), %v336_v0  ;;  %339 = vst [vmem:[%s318_s0 + $0x4] sm:$0xf] (%p1864_p7), %v338_v1  ;;  %v342_v3 = vld [vmem:[%s320_s9 + $0x18] sm:$0xf] (%p1864_p7) }
  0x98   : > { %v344_v4 = vld [vmem:[%s320_s9 + $0x20] sm:$0xf] (%p1864_p7)  ;;  %341 = vst [vmem:[%s318_s0 + $0x8] sm:$0xf] (%p1864_p7), %v340_v2  ;;  %343 = vst [vmem:[%s318_s0 + $0xc] sm:$0xf] (%p1864_p7), %v342_v3 }
  0x99   : > { %345 = vst [vmem:[%s318_s0 + $0x10] sm:$0xf] (%p1864_p7), %v344_v4  ;;  %v346_v5 = vld [vmem:[%s320_s9 + $0x28] sm:$0xf] (%p1864_p7)  ;;  %v348_v6 = vld [vmem:[%s320_s9 + $0x30] sm:$0xf] (%p1864_p7) }
  0x9a   : > { %v350_v7 = vld [vmem:[%s320_s9 + $0x38] sm:$0xf] (%p1864_p7)  ;;  %347 = vst [vmem:[%s318_s0 + $0x14] sm:$0xf] (%p1864_p7), %v346_v5  ;;  %349 = vst [vmem:[%s318_s0 + $0x18] sm:$0xf] (%p1864_p7), %v348_v6 }
  0x9b   : > { %351 = vst [vmem:[%s318_s0 + $0x1c] sm:$0xf] %v350_v7 }
  0x9c PF: > { %p1865_p1 = scmp.ne.s32.totalorder %s1860_s15, 0 }
  0x9d   : > { %s401_s7 = sand.u32 (!%p1865_p1), 1, %s1330_s30   ;;  %p1866_p6 = scmp.ne.s32.totalorder (!%p1865_p1), %s1849_s23, 0 }
  0x9e   : > { %399 = sbr.rel (%p1865_p1) target bundleno = 675 (0x2a3), region = 85  ;;  %s1677_s19 = sshll.u32 (!%p1865_p1), %s401_s7, 3 }
  0x9f   : > { %s402_s24 = scalar_lea.sflag (!%p1865_p1), [#allocation4], %s401_s7 }
  0xa5   : > { %1289 = dma.done.wait (%p1866_p6), %s402_s24, 128  }
  0xa6   : > { %1291 = vsyncadd (%p1866_p6), %s402_s24, 4294967168  ;;  %p1867_p11 = scmp.ne.s32.totalorder %s1847_s20, 0 }
  0xa8   : > { %1293 = dma.done.wait (%p1867_p11), [#allocation7], 32  }
  0xa9   : > { %1295 = vsyncadd (%p1867_p11), [#allocation7], 4294967264 }
  0xaa   : > { %1297 = dma.done.wait (%p1867_p11), [#allocation10], 256  }
  0xab   : > { %1299 = vsyncadd (%p1867_p11), [#allocation10], 4294967040  ;;  %s1868_s15 = sld [smem:[#allocation18_spill]]  ;;  %s1869_s17 = sld [smem:[#allocation21_spill]] }
  0xac   : > { %s1870_s16 = sld [smem:[#allocation20_spill]]  ;;  %s423_s23 = sand.u32 1, %s1318_s27  }
  0xad   : > { %s876_s29 = sshll.u32 %s423_s23, 5  ;;  %s1871_s21 = sld [smem:[#allocation30_spill]] }
  0xae   : > { %s1872_s24 = sld [smem:[#allocation29_spill]]  ;;  %s1708_s14 = scalar_lea.vmem [#allocation11], %s876_s29 }
  0xb1   : > { %s464_s6 = sand.u32 1, %s1868_s15   ;;  %s878_s25 = sshll.u32 %s1869_s17, 1 }
  0xb2   : > { %s877_s22 = sshll.u32 %s464_s6, 4  ;;  %p474_p10 = scmp.lt.s32.totalorder %s1870_s16, 1 }
  0xb3   : > { %p468_p0 = scmp.lt.s32.totalorder %s878_s25, 3  ;;  %s1710_s15 = scalar_lea.vmem [#allocation12], %s877_s22 }
  0xb4   : > { %s1699_s10 = scalar_select %p474_p10, %s1870_s16, 1 }
  0xb5   : > { %s1909_s25 = smov (!%p468_p0, %s878_s25), 3  ;;  %p880_p4 = scmp.ne.s32.totalorder %s1870_s16, 0 }
  0xb6   : > { %s476_s18 = scalar_lea.vmem %s1871_s21, %s1699_s10  ;;  %s879_s9 = sshll.u32 %s1909_s25, 3  ;;  %v485_v8 = vld [vmem:[#allocation9] sm:$0xff] (!%p880_p4)  ;;  %v486_v9 = vld [vmem:[#allocation9 + $0x8] sm:$0xff] (!%p880_p4)  ;;  %vm494_vm0 = vcmask (!%p880_p4), 130048   ;;  %v881_v13 = vld [vmem:[#allocation8] ss:$0 sm:$0xff] (!%p880_p4) }
  0xb7   : > { %s471_s27 = scalar_lea.vmem %s1872_s24, %s879_s9  ;;  %482 = sbr.rel (%p880_p4) target bundleno = 426 (0x1aa), region = 109  ;;  %v931_v11 = vpack.c.bf16 (!%p880_p4), %v486_v9, %v485_v8  ;;  %v884_v17 = vld [vmem:[#allocation6] ss:$0 sm:$0xff] (!%p880_p4)  ;;  %vm600_vm1 = vcmask (!%p880_p4), 523264  }
  0xb8   : > { %v483_v10 = vld [vmem:[%s471_s27] sm:$0xff] (!%p880_p4)  ;;  %v484_v12 = vld [vmem:[%s471_s27 + $0x8] sm:$0xff] (!%p880_p4)  ;;  %s1873_s17 = scalar_lea.vmem (!%p880_p4), [#allocation3], %s1677_s19 }
  0xb9   : > { %916 = vmatprep.mubr.msk.f32.mxu0 (!%p880_p4), %vm494_vm0, %v483_v10  ;;  %932 = vmatprep.subr.bf16.mxu0 (!%p880_p4), %v931_v11  ;;  %v900_v25 = vld [vmem:[%s1873_s17] sm:$0xff] (!%p880_p4)  }
  0xba   : > { %934 = vmatpush3.bf16.msra.mxu0 (!%p880_p4), %v931_v11  ;;  %v902_v26 = vunpack.c.h.bf16 (!%p880_p4), %v900_v25  ;;  %v901_v27 = vunpack.c.l.bf16 (!%p880_p4), %v900_v25 }
  0xbd   : > { %917 = vmatmul.mubr.msk.f32.vlgmr.msra.gmra.mrb[0].mxu0 (!%p880_p4), %vm494_vm0, %v484_v12 }
 0x190   : > { %v918_v14 = vpop.f32.mrb[0].mxu0 }
 0x191   : > { %v573_v15 = vadd.f32 %v918_v14, %v881_v13  ;;  %v567_v16 = vpop.f32.mrb[1].mxu0 }
 0x192   : > { %v568_v18 = vadd.f32 %v881_v13, %v567_v16 }
 0x193   : > { %v577_v19 = vmul.f32 %v573_v15, %v573_v15  ;;  %v596_v28 = vmul.f32 %v902_v26, %v573_v15 }
 0x194   : > { %v576_v20 = vmul.f32 %v568_v18, %v568_v18  ;;  %v595_v30 = vmul.f32 %v901_v27, %v568_v18 }
 0x195   : > { %v586_v21 = vmul.f32 %v884_v17, %v577_v19 }
 0x196   : > { %v585_v22 = vmul.f32 %v884_v17, %v576_v20 }
 0x197   : > { %v588_v23 = vadd.f32 1e-08, %v586_v21 }
 0x198   : > { %v587_v24 = vadd.f32 1e-08, %v585_v22 }
 0x199   : > { %1088 = vrsqrt.f32 %v588_v23 }
 0x19a   : > { %1090 = vrsqrt.f32 %v587_v24 }
 0x1a3   : > { %v1089_v29 = vpop.eup %1088 }
 0x1a4   : > { %v1091_v31 = vpop.eup %1090  ;;  %v598_v32 = vmul.f32 %v1089_v29, %v596_v28 }
 0x1a5   : > { %v597_v33 = vmul.f32 %v1091_v31, %v595_v30 }
 0x1a7   : > { %v599_v34 = vpack.c.bf16 %v598_v32, %v597_v33 }
 0x1a9   : > { %601 = vst.msk [vmem:[#allocation2] sm:$0xff] %vm600_vm1, %v599_v34 }
 0x1aa PF: > { %v1092_v35 = vld [vmem:[%s1708_s14] sm:$0xff]   ;;  %v1364_v36 = vmov 0.0   ;;  %s1874_s19 = sld [smem:[#allocation21_spill]]  ;;  %s1875_s16 = sld [smem:[#allocation20_spill]]  ;;  %v1093_v37 = vld [vmem:[%s1708_s14 + $0x8] sm:$0xff]   ;;  %vm1365_vm2 = vmmov 0  }
 0x1ab   : > { %919 = vmatprep.subr.bf16.mxu0 %v1364_v36  ;;  %927 = vmatprep.mubr.msk.bf16.mxu0 %vm1365_vm2, %v1364_v36  ;;  %v1094_v38 = vld [vmem:[%s1708_s14 + $0x10] sm:$0xff]   ;;  %v1095_v39 = vld [vmem:[%s1708_s14 + $0x18] sm:$0xff]   ;;  %vm642_vm3 = vcmask 523264   ;;  %s1878_s21 = sld [smem:[#allocation27_spill]]  ;;  %s705_s0 = sshll.u32 %s1710_s15, 4  ;;  %s1732_s0 = int_to_ptr.vmem [resolvable:$true] %s705_s0 }
 0x1ac   : > { %920 = vmatpush3.bf16.msra.mxu0 %v1092_v35  ;;  %v885_v41 = vld [vmem:[%s476_s18] ss:$0 sm:$0xff]  ;;  %s1879_s24 = sld [smem:[#allocation31_spill]]  ;;  %s1738_s10 = scalar_lea.sflag [#allocation5], %s464_s6 }
 0x1ad   : > { %921 = vmatprep.subr.bf16.mxu0 %v1364_v36  ;;  %s1208_s18 = scalar_lea.vmem %s1732_s0, 256 }
 0x1ae   : > { %p1209_p5 = scmp.ne.s32.totalorder %s1732_s0, %s1208_s18 }
 0x1b0   : > { %922 = vmatpush3.bf16.msra.mxu0 %v1093_v37  ;;  %v602_v40 = vld [vmem:[#allocation2] sm:$0xff]  ;;  %s898_s29 = sshll.u32 %s1874_s19, 2  ;;  %s1366_s19 = smov [#allocation12]  }
 0x1b1   : > { %923 = vmatprep.subr.bf16.mxu0 %v1364_v36  ;;  %s702_s22 = sadd.s32 %s1875_s16, %s898_s29  ;;  %p1881_p2 = scmp.ne.s32.totalorder %s1878_s21, 0 }
 0x1b2   : > { %s894_s9 = sshll.u32 %s702_s22, 7  ;;  %s1880_s17 = smov %s1879_s24 }
 0x1b3   : > { %s1730_s27 = scalar_lea.hbm %s1879_s24, %s894_s9  ;;  %p1210_p12 = pnand %p1209_p5, %p1881_p2 }
 0x1b4   : > { %924 = vmatpush3.bf16.msra.mxu0 %v1094_v38  ;;  %s1212_s16 = sshll.u32 %s1366_s19, 4  ;;  %s1213_s16 = int_to_ptr.vmem [resolvable:$false] %s1212_s16 }
 0x1b5   : > { %925 = vmatprep.subr.bf16.mxu0 %v1364_v36  ;;  %p1211_p8 = pneg %p1210_p12  ;;  %s1214_s29 = scalar_lea.vmem %s1213_s16, 512 }
 0x1b6   : > { %p1215_p13 = scmp.lt.s32.totalorder %s1732_s0, %s1213_s16  ;;  %p1216_p9 = scmp.lt.s32.totalorder %s1214_s29, %s1208_s18 }
 0x1b8   : > { %926 = vmatpush3.bf16.msra.mxu0 %v1095_v39  ;;  %p1217_p3 = por %p1216_p9, %p1215_p13 }
 0x1ba   : > { %p1218_p7 = pnand %p1217_p3, %p1211_p8 }
 0x1bb   : > { %928 = vmatmul.mubr.msk.bf16.vlgmr.msra.gmra.mrb[0].mxu0 %vm642_vm3, %v602_v40 }
 0x28e   : > { %v680_v42 = vpop.f32.mrb[0].mxu0 }
 0x28f   : > { %v681_v43 = vadd.f32 %v885_v41, %v680_v42  ;;  %v929_v44 = vpop.f32.mrb[1].mxu0 }
 0x290   : > { %v683_v45 = vpop.f32.mrb[2].mxu0 }
 0x291   : > { %687 = vst [vmem:[%s1710_s15] sm:$0xff] %v681_v43  ;;  %v684_v46 = vadd.f32 %v885_v41, %v683_v45  ;;  %v930_v47 = vpop.f32.mrb[3].mxu0 }
 0x293   : > { %688 = vst [vmem:[%s1710_s15 + $0x8] sm:$0xff] %v684_v46 }
 0x294   : > { %1221 = shalt.err (!%p1218_p7)
}
 0x295   : > { %s1222_s6 = scalar_lea.hbm %s1730_s27, 256  ;;  %s1226_s22 = scalar_lea.hbm %s1880_s17, 1024 }
 0x296   : > { %p1223_p1 = scmp.ne.s32.totalorder %s1730_s27, %s1222_s6  ;;  %p1227_p10 = scmp.lt.u32.totalorder %s1730_s27, %s1880_s17 }
 0x297   : > { %p1228_p0 = scmp.lt.u32.totalorder %s1226_s22, %s1222_s6  ;;  %p1230_p5 = scmp.lt.u32.totalorder %s1222_s6, %s1730_s27 }
 0x298   : > { %p1224_p6 = pnand %p1223_p1, %p1881_p2 }
 0x299   : > { %p1229_p4 = por %p1228_p0, %p1227_p10 }
 0x29a   : > { %p1225_p11 = pneg %p1224_p6 }
 0x29b   : > { %p1231_p12 = por %p1230_p5, %p1229_p4 }
 0x29d   : > { %p1232_p8 = pnand %p1231_p12, %p1225_p11 }
 0x29f   : > { %1235 = shalt.err (!%p1232_p8)
}
 0x2a0   : > { %s1367_s26 = smov 128   ;;  %s1368_s9 = smov 256  }
 0x2a1   : > { %s1369_s14 = smov 8  }
 0x2a2   : > { %949 = dma.vmem_to_hbm [thread:$0]  (%p1881_p2), %s1732_s0, 256, %s1730_s27, %s1738_s10, %s1367_s26, %s1368_s9, %s1369_s14  }
 0x2a3 PF: > { %s1882_s7 = sld [smem:[#allocation17_spill]]  ;;  %s1883_s24 = sld [smem:[#allocation28_spill]] }
 0x2a4   : > { %p971_p13 = scmp.ge.s32.totalorder %s1354_s13, 2 }
 0x2a9   : > { %s720_s18 = sand.u32 1, %s1882_s7   ;;  %p1884_p9 = scmp.ne.s32.totalorder %s1883_s24, 0 }
 0x2aa   : > { %s721_s19 = scalar_lea.sflag [#allocation5], %s720_s18 }
 0x2ab   : > { %p962_p3 = pnand %p971_p13, %p1884_p9 }
 0x2ad   : > { %1301 = dma.done.wait (!%p962_p3), %s721_s19, 256  }
 0x2ae   : > { %1303 = vsyncadd (!%p962_p3), %s721_s19, 4294967040  ;;  %s25_s13 = sadd.s32 1, %s1354_s13   ;;  %s1886_s24 = sld [smem:[#allocation18_spill]] }
 0x2af   : > { %p1767_p7 = scmp.ge.s32.totalorder %s25_s13, 6   ;;  %s1887_s25 = sld [smem:[#allocation19_spill]] }
 0x2b0   : > { %s1888_s26 = sld [smem:[#allocation26_spill]]  ;;  %s1889_s21 = sld [smem:[#allocation24_spill]] }
 0x2b1   : > { %s1890_s0 = sld [smem:[#allocation25_spill]]  ;;  %s1891_s6 = sld [smem:[#allocation22_spill]] }
 0x2b2   : > { %s1892_s15 = sld [smem:[#allocation23_spill]]  ;;  %s1893_s27 = smov %s1322_s28 }
 0x2b3   : > { %s1895_s29 = smov %s1330_s30  ;;  %s1896_s30 = smov %s1334_s8 }
 0x2b4   : > { %s1898_s9 = smov %s1346_s11  ;;  %s1899_s10 = smov %s1350_s12 }
 0x2b5   :  { %24 = sbr.rel (!%p1767_p7) target bundleno = 16 (0x10), region = 164 }
 0x2b6   : > { %s1894_s28 = smov %s1889_s21 }
 0x2b7   : > { %s1897_s8 = smov %s1890_s0  ;;  %s1900_s11 = smov %s1891_s6 }
 0x2b8   : > { %s1901_s12 = smov %s1892_s15 }
 0x2bc   :  { %726 = vsyncpa [#allocation4], 1 }
 0x2bd   :  { %728 = vsyncpa [#allocation4 + $0x1], 1 }
 0x2be   :  { %729 = vsyncpa [#allocation7], 1 }
 0x2bf   :  { %730 = vsyncpa [#allocation10], 1 }
 0x2c0   :  { %731 = vsyncpa [#allocation5], 1 }
 0x2c1   :  { %733 = vsyncpa [#allocation5 + $0x1], 1 }

</bundles_post_ra>
